<compile_context>
chip_gen: v6e
topology: v6e:2x2x1
jax: 0.10.0
libtpu: 0.0.40
codegen_flags: <defaults>
</compile_context>

<pallas_src>
import jax
import jax.numpy as jnp
from jax import lax
from jax.experimental import pallas as pl
from jax.experimental.pallas import tpu as pltpu


def _sobelxy_kernel(x_ref, o_ref, xp_ref):
    # x_ref/o_ref: (Bp, H, W); xp_ref: (Bp, H+2, W+2) f32 VMEM scratch.
    Bp, H, W = o_ref.shape
    f32 = jnp.float32

    # Rebuild the zero halo.  The scratch persists across grid steps per core,
    # so the border is re-zeroed every step (four tiny masked stores) rather
    # than being gated on program_id == 0, which would never fire on the
    # second TensorCore when the parallel grid axis is split across cores.
    xp_ref[:, 0:1, :] = jnp.zeros((Bp, 1, W + 2), f32)
    xp_ref[:, H + 1:H + 2, :] = jnp.zeros((Bp, 1, W + 2), f32)
    xp_ref[:, :, 0:1] = jnp.zeros((Bp, H + 2, 1), f32)
    xp_ref[:, :, W + 1:W + 2] = jnp.zeros((Bp, H + 2, 1), f32)
    # Interior: single upcast to f32 happens here, once per element.
    xp_ref[:, 1:H + 1, 1:W + 1] = x_ref[...].astype(f32)

    # Row taps of the padded slab (full padded width W+2), already f32.
    top = xp_ref[:, 0:H, :]          # x[i-1, :]
    mid = xp_ref[:, 1:H + 1, :]      # x[i,   :]
    bot = xp_ref[:, 2:H + 2, :]      # x[i+1, :]

    # Separable Sobel: vertical pass first ...
    t = top + 2.0 * mid + bot        # vertical [1, 2, 1]
    u = top - bot                    # vertical [1, 0, -1]

    # ... then the horizontal (lane) taps.
    def col(v, dj):                  # (Bp, H, W) column tap at padded offset dj
        return lax.slice(v, (0, 0, dj), (Bp, H, dj + W))

    sobelx = col(t, 0) - col(t, 2)                       # horizontal [1, 0, -1]
    sobely = col(u, 0) + 2.0 * col(u, 1) + col(u, 2)     # horizontal [1, 2, 1]

    o_ref[...] = (jnp.abs(sobelx) + jnp.abs(sobely)).astype(o_ref.dtype)


def _choose_block_planes(P, H, W, itemsize):
    """Planes per grid step: target ~1 MiB input tile, must divide P."""
    target_bytes = 1 << 20
    plane_bytes = H * W * itemsize
    bp = max(1, min(P, target_bytes // max(plane_bytes, 1)))
    # Prefer >= 2 grid steps when possible so both v7x TensorCores get work.
    if bp >= P and P > 1 and P % 2 == 0:
        bp = P // 2
    while P % bp != 0:
        bp -= 1
    return bp


def sobelxy(x, *, block_planes=None):
    """x: (N, C, H, W) float array -> |sobel_x(x)| + |sobel_y(x)|, same shape."""
    N, C, H, W = x.shape
    P = N * C
    xr = x.reshape(P, H, W)          # metadata-only reshape, no HBM pass

    Bp = block_planes if block_planes is not None else _choose_block_planes(
        P, H, W, x.dtype.itemsize)
    assert P % Bp == 0

    out = pl.pallas_call(
        _sobelxy_kernel,
        out_shape=jax.ShapeDtypeStruct((P, H, W), x.dtype),
        grid_spec=pltpu.PrefetchScalarGridSpec(
            num_scalar_prefetch=0,
            grid=(P // Bp,),
            in_specs=[pl.BlockSpec((Bp, H, W), lambda i: (i, 0, 0))],
            out_specs=pl.BlockSpec((Bp, H, W), lambda i: (i, 0, 0)),
            scratch_shapes=[pltpu.VMEM((Bp, H + 2, W + 2), jnp.float32)],
        ),
        compiler_params=pltpu.CompilerParams(
            dimension_semantics=("parallel",)),
    )(xr)

    return out.reshape(N, C, H, W)


def sobelxy_ref(x):
    """Pure-JAX reference (same semantics as the PyTorch module)."""
    kx = jnp.array([[1, 0, -1], [2, 0, -2], [1, 0, -1]], dtype=x.dtype)
    ky = kx.T
    N, C, H, W = x.shape
    xr = x.reshape(N * C, 1, H, W)

    def dwconv(k):
        return lax.conv_general_dilated(
            xr, k.reshape(1, 1, 3, 3), window_strides=(1, 1),
            padding=((1, 1), (1, 1)),
            dimension_numbers=("NCHW", "OIHW", "NCHW"))

    sx = dwconv(kx)
    sy = dwconv(ky)
    return (jnp.abs(sx) + jnp.abs(sy)).reshape(N, C, H, W)


if __name__ == "__main__":
    key = jax.random.PRNGKey(0)

    # Primary check: shape implied by the module at small size.
    N, C, H, W = 2, 4, 16, 16
    x = jax.random.normal(key, (N, C, H, W), dtype=jnp.float32)
    out = jax.block_until_ready(sobelxy(x))
    ref = sobelxy_ref(x)
    assert out.shape == (N, C, H, W)
    assert jnp.allclose(out, ref, atol=1e-5, rtol=1e-5)

    # Secondary check: odd plane count / rectangular plane (single grid step).
    key2 = jax.random.PRNGKey(1)
    x2 = jax.random.normal(key2, (1, 3, 8, 24), dtype=jnp.float32)
    out2 = jax.block_until_ready(sobelxy(x2))
    ref2 = sobelxy_ref(x2)
    assert jnp.allclose(out2, ref2, atol=1e-5, rtol=1e-5)

    print("KERNEL_OK")
</pallas_src>

<mosaic_0001>
module attributes {stable_mosaic.version = 11 : i64} {
  func.func @_sobelxy_kernel(%arg0: i32, %arg1: memref<4x16x16xf32, #tpu.memory_space<vmem>>, %arg2: memref<4x16x16xf32, #tpu.memory_space<vmem>>, %arg3: memref<4x18x18xf32, #tpu.memory_space<vmem>>) attributes {dimension_semantics = [#tpu.dimension_semantics<parallel>], iteration_bounds = array<i64: 2>, scalar_prefetch = 0 : i64, scratch_operands = 1 : i64, tpu.core_type = #tpu.core_type<tc>, window_params = [{transform_indices = @transform_0, window_bounds = array<i64: 4, 16, 16>}, {transform_indices = @transform_1, window_bounds = array<i64: 4, 16, 16>}]} {
    %cst = arith.constant 0.000000e+00 : f32
    %0 = vector.broadcast %cst : f32 to vector<4x1x18xf32>
    %c0 = arith.constant 0 : index
    %c0_0 = arith.constant 0 : index
    %c0_1 = arith.constant 0 : index
    %1 = vector.load %arg3[%c0, %c0_0, %c0_1] : memref<4x18x18xf32, #tpu.memory_space<vmem>>, vector<4x1x18xf32>
    tpu.vector_store %arg3[%c0, %c0_0, %c0_1], %0 {strides = array<i32>} : memref<4x18x18xf32, #tpu.memory_space<vmem>>, vector<4x1x18xf32>,
    %cst_2 = arith.constant 0.000000e+00 : f32
    %2 = vector.broadcast %cst_2 : f32 to vector<4x1x18xf32>
    %c0_3 = arith.constant 0 : index
    %c17 = arith.constant 17 : index
    %c0_4 = arith.constant 0 : index
    %3 = vector.load %arg3[%c0_3, %c17, %c0_4] : memref<4x18x18xf32, #tpu.memory_space<vmem>>, vector<4x1x18xf32>
    tpu.vector_store %arg3[%c0_3, %c17, %c0_4], %2 {strides = array<i32>} : memref<4x18x18xf32, #tpu.memory_space<vmem>>, vector<4x1x18xf32>,
    %cst_5 = arith.constant 0.000000e+00 : f32
    %4 = vector.broadcast %cst_5 : f32 to vector<4x18x1xf32>
    %c0_6 = arith.constant 0 : index
    %c0_7 = arith.constant 0 : index
    %c0_8 = arith.constant 0 : index
    %5 = vector.load %arg3[%c0_6, %c0_7, %c0_8] : memref<4x18x18xf32, #tpu.memory_space<vmem>>, vector<4x18x1xf32>
    tpu.vector_store %arg3[%c0_6, %c0_7, %c0_8], %4 {strides = array<i32>} : memref<4x18x18xf32, #tpu.memory_space<vmem>>, vector<4x18x1xf32>,
    %cst_9 = arith.constant 0.000000e+00 : f32
    %6 = vector.broadcast %cst_9 : f32 to vector<4x18x1xf32>
    %c0_10 = arith.constant 0 : index
    %c0_11 = arith.constant 0 : index
    %c17_12 = arith.constant 17 : index
    %7 = vector.load %arg3[%c0_10, %c0_11, %c17_12] : memref<4x18x18xf32, #tpu.memory_space<vmem>>, vector<4x18x1xf32>
    tpu.vector_store %arg3[%c0_10, %c0_11, %c17_12], %6 {strides = array<i32>} : memref<4x18x18xf32, #tpu.memory_space<vmem>>, vector<4x18x1xf32>,
    %c0_13 = arith.constant 0 : index
    %c0_14 = arith.constant 0 : index
    %c0_15 = arith.constant 0 : index
    %8 = vector.load %arg1[%c0_13, %c0_14, %c0_15] : memref<4x16x16xf32, #tpu.memory_space<vmem>>, vector<4x16x16xf32>
    %c0_16 = arith.constant 0 : index
    %c1 = arith.constant 1 : index
    %c1_17 = arith.constant 1 : index
    %9 = vector.load %arg3[%c0_16, %c1, %c1_17] : memref<4x18x18xf32, #tpu.memory_space<vmem>>, vector<4x16x16xf32>
    tpu.vector_store %arg3[%c0_16, %c1, %c1_17], %8 {strides = array<i32>} : memref<4x18x18xf32, #tpu.memory_space<vmem>>, vector<4x16x16xf32>,
    %c0_18 = arith.constant 0 : index
    %c0_19 = arith.constant 0 : index
    %c0_20 = arith.constant 0 : index
    %10 = vector.load %arg3[%c0_18, %c0_19, %c0_20] : memref<4x18x18xf32, #tpu.memory_space<vmem>>, vector<4x16x18xf32>
    %c0_21 = arith.constant 0 : index
    %c1_22 = arith.constant 1 : index
    %c0_23 = arith.constant 0 : index
    %11 = vector.load %arg3[%c0_21, %c1_22, %c0_23] : memref<4x18x18xf32, #tpu.memory_space<vmem>>, vector<4x16x18xf32>
    %c0_24 = arith.constant 0 : index
    %c2 = arith.constant 2 : index
    %c0_25 = arith.constant 0 : index
    %12 = vector.load %arg3[%c0_24, %c2, %c0_25] : memref<4x18x18xf32, #tpu.memory_space<vmem>>, vector<4x16x18xf32>
    %cst_26 = arith.constant 2.000000e+00 : f32
    %13 = vector.broadcast %cst_26 : f32 to vector<4x16x18xf32>
    %14 = arith.mulf %13, %11 : vector<4x16x18xf32>
    %15 = arith.addf %10, %14 : vector<4x16x18xf32>
    %16 = arith.addf %15, %12 : vector<4x16x18xf32>
    %17 = arith.subf %10, %12 : vector<4x16x18xf32>
    %18 = vector.extract_strided_slice %16 {offsets = [0, 0, 0], sizes = [4, 16, 16], strides = [1, 1, 1]} : vector<4x16x18xf32> to vector<4x16x16xf32>
    %19 = vector.extract_strided_slice %16 {offsets = [0, 0, 2], sizes = [4, 16, 16], strides = [1, 1, 1]} : vector<4x16x18xf32> to vector<4x16x16xf32>
    %20 = arith.subf %18, %19 : vector<4x16x16xf32>
    %21 = vector.extract_strided_slice %17 {offsets = [0, 0, 0], sizes = [4, 16, 16], strides = [1, 1, 1]} : vector<4x16x18xf32> to vector<4x16x16xf32>
    %22 = vector.extract_strided_slice %17 {offsets = [0, 0, 1], sizes = [4, 16, 16], strides = [1, 1, 1]} : vector<4x16x18xf32> to vector<4x16x16xf32>
    %cst_27 = arith.constant 2.000000e+00 : f32
    %23 = vector.broadcast %cst_27 : f32 to vector<4x16x16xf32>
    %24 = arith.mulf %23, %22 : vector<4x16x16xf32>
    %25 = arith.addf %21, %24 : vector<4x16x16xf32>
    %26 = vector.extract_strided_slice %17 {offsets = [0, 0, 2], sizes = [4, 16, 16], strides = [1, 1, 1]} : vector<4x16x18xf32> to vector<4x16x16xf32>
    %27 = arith.addf %25, %26 : vector<4x16x16xf32>
    %28 = math.absf %20 : vector<4x16x16xf32>
    %29 = math.absf %27 : vector<4x16x16xf32>
    %30 = arith.addf %28, %29 : vector<4x16x16xf32>
    %c0_28 = arith.constant 0 : index
    %c0_29 = arith.constant 0 : index
    %c0_30 = arith.constant 0 : index
    %31 = vector.load %arg2[%c0_28, %c0_29, %c0_30] : memref<4x16x16xf32, #tpu.memory_space<vmem>>, vector<4x16x16xf32>
    tpu.vector_store %arg2[%c0_28, %c0_29, %c0_30], %30 {strides = array<i32>} : memref<4x16x16xf32, #tpu.memory_space<vmem>>, vector<4x16x16xf32>,
    return
  }
  func.func @transform_0(%arg0: i32) -> (i32, i32, i32) {
    %c0_i32 = arith.constant 0 : i32
    %c0_i32_0 = arith.constant 0 : i32
    %c0_i32_1 = arith.constant 0 : i32
    return %arg0, %c0_i32, %c0_i32_0 : i32, i32, i32
  }
  func.func @transform_1(%arg0: i32) -> (i32, i32, i32) {
    %c0_i32 = arith.constant 0 : i32
    %c0_i32_0 = arith.constant 0 : i32
    %c0_i32_1 = arith.constant 0 : i32
    return %arg0, %c0_i32, %c0_i32_0 : i32, i32, i32
  }
}

</mosaic_0001>

<bundles_post_ra>
// kernel: tpu_custom_call.1
= control target key start
LH: loop header
LB: loop body
LE: loop exit
PB: predicated region body
PF: predicated region fallthrough
CT: control target
= control target key end

     0   :  { %6 = vsyncpa [#allocation4], 0  ;;  %s1044_s0 = inlined_call_operand.hbm [shape: f32[8,16,16], index: 0, kind: input, shape index: {}]   ;;  %s1045_s1 = inlined_call_operand.hbm [shape: f32[8,16,16], index: 1, kind: output, shape index: {}]  }
   0x1   :  { %8 = vsyncpa [#allocation4 + $0x1], 0 }
   0x2   :  { %9 = vsyncpa [#allocation5], 0 }
   0x3   :  { %11 = vsyncpa [#allocation5 + $0x1], 0  ;;  %s717_s6 = smov 0   ;;  %s719_s7 = smov 0  }
   0x4   :  { %s721_s8 = smov 0   ;;  %s723_s9 = smov 0  }
   0x5 LB: > { %s738_s10 = sadd.s32 4294967295, %s695_s9   ;;  %s529_s11 = sadd.s32 4294967294, %s695_s9   ;;  %s695_s9 = sphi %s723_s9, %s1060_s9   ;;  %s691_s8 = sphi %s721_s8, %s1059_s8   ;;  %s687_s7 = sphi %s719_s7, %s1058_s7   ;;  %s683_s6 = sphi %s717_s6, %s1057_s6  }
   0x6   : > { %s742_s12 = sadd.s32 1, %s695_s9   ;;  %s24_s13 = sadd.s32 1, %s691_s8 }
   0x7   : > { %s21_s14 = ssub.s32 %s695_s9, %s742_s12  ;;  %p31_p0 = scmp.ne.s32.totalorder %s691_s8, %s687_s7 }
   0x8   : > { %p22_p1 = scmp.eq.s32.totalorder %s21_s14, 0  ;;  %p32_p2 = scmp.eq.s32.totalorder %s695_s9, 0 }
   0x9   : > { %p37_p3 = scmp.ne.s32.totalorder %s687_s7, %s683_s6  ;;  %p38_p4 = scmp.eq.s32.totalorder %s738_s10, 0 }
   0xa   : > { %s754_s15 = scalar_select %p22_p1, %s691_s8, %s24_s13  }
   0xb   : > { %p756_p5 = por %p32_p2, %p31_p0  ;;  %p760_p6 = por %p38_p4, %p37_p3 }
   0xc   : > { %p61_p7 = scmp.eq.s32.totalorder %s738_s10, 1  ;;  %p67_p8 = scmp.eq.s32.totalorder %s529_s11, 1 }
   0xd   : > { %s1049_s17 = scalar_select %p760_p6, 1, 0 }
   0xe   : > { %p561_p10 = scmp.lt.s32.totalorder %s695_s9, 2  ;;  %p767_p11 = por %p61_p7, %p31_p0 }
   0xf   : > { %p771_p12 = por %p67_p8, %p37_p3  ;;  %s87_s20 = sand.u32 1, %s691_s8  }
  0x10   : > { %s1050_s18 = scalar_select %p767_p11, 1, 0 }
  0x11   : > { %s1051_s19 = scalar_select %p771_p12, 1, 0 }
  0x12   : > { %s546_s21 = sshll.u32 %s695_s9, 10  ;;  %s532_s22 = sshll.u32 %s87_s20, 6 }
  0x13   : > { %s780_s25 = scalar_lea.hbm %s1044_s0, %s546_s21  ;;  %s91_s26 = scalar_lea.vmem [#allocation3], %s532_s22 }
  0x14   : > { %s99_s27 = sshll.u32 %s91_s26, 4  ;;  %p784_p13 = pnand %p561_p10, %p756_p5  ;;  %s788_s27 = int_to_ptr.vmem [resolvable:$true] %s99_s27 }
  0x15   : > { %s790_s29 = scalar_lea.sflag [#allocation4], %s87_s20  ;;  %s603_s30 = scalar_lea.hbm %s780_s25, 1024 }
  0x16   : > { %p604_p0 = scmp.ne.s32.totalorder %s780_s25, %s603_s30  ;;  %p605_p1 = pneg %p784_p13 }
  0x17   : > { %s608_s4 = scalar_lea.hbm %s1044_s0, 2048  ;;  %p609_p4 = scmp.lt.s32.totalorder %s780_s25, %s1044_s0 }
  0x18   : > { %p606_p2 = pnand %p605_p1, %p604_p0  ;;  %p610_p5 = scmp.lt.s32.totalorder %s608_s4, %s603_s30 }
  0x1a   : > { %p607_p3 = pneg %p606_p2  ;;  %p611_p7 = por %p610_p5, %p609_p4 }
  0x1c   : > { %p612_p8 = pnand %p611_p7, %p607_p3 }
  0x1e   : > { %615 = shalt.err (!%p612_p8)
}
  0x1f   : > { %s616_s13 = scalar_lea.vmem %s788_s27, 1024  ;;  %s697_s14 = smov [#allocation3]  }
  0x20   : > { %p617_p10 = scmp.ne.s32.totalorder %s788_s27, %s616_s13  ;;  %s621_s16 = sshll.u32 %s697_s14, 4  ;;  %s622_s16 = int_to_ptr.vmem [resolvable:$false] %s621_s16 }
  0x21   : > { %s623_s20 = scalar_lea.vmem %s622_s16, 2048  ;;  %p624_p2 = scmp.lt.s32.totalorder %s788_s27, %s622_s16 }
  0x22   : > { %p619_p9 = pnand %p617_p10, %p605_p1  ;;  %p625_p12 = scmp.lt.s32.totalorder %s623_s20, %s616_s13 }
  0x24   : > { %p620_p0 = pneg %p619_p9  ;;  %p626_p11 = por %p625_p12, %p624_p2 }
  0x26   : > { %p627_p6 = pnand %p626_p11, %p620_p0 }
  0x28   : > { %630 = shalt.err (!%p627_p6)
}
  0x29   : > { %s698_s21 = smov 128   ;;  %s699_s22 = smov 8  }
  0x2a   : > { %556 = dma.hbm_to_vmem [thread:$0]  (!%p784_p13), %s780_s25, 1024, %s788_s27, %s790_s29, %s698_s21, %s698_s21, %s699_s22  }
  0x2b   : > { %p536_p9 = scmp.ge.s32.totalorder %s695_s9, 1  ;;  %p107_p1 = scmp.lt.s32.totalorder %s695_s9, 3 }
  0x2d   : > { %p108_p3 = pnand %p536_p9, %p107_p1 }
  0x2e   : > { %s814_s23 = sand.u32 (!%p108_p3), 1, %s687_s7   ;;  %p1053_p6 = scmp.ne.s32.totalorder (!%p108_p3), %s1049_s17, 0 }
  0x2f   : > { %111 = sbr.rel (%p108_p3) target bundleno = 365 (0x16d), region = 24  ;;  %s537_s24 = sshll.u32 (!%p108_p3), %s814_s23, 6 }
  0x30   : > { %s114_s26 = scalar_lea.sflag (!%p108_p3), [#allocation4], %s814_s23  ;;  %s820_s30 = scalar_lea.vmem (!%p108_p3), [#allocation3], %s537_s24 }
  0x34   : > { %674 = dma.done.wait (%p1053_p6), %s114_s26, 1024  }
  0x35   : > { %676 = vsyncadd (%p1053_p6), %s114_s26, 4294966272  ;;  %vm138_vm0 = vcmask 139264   ;;  %vm147_vm1 = vcmask 7168   ;;  %vm161_vm2 = vcmask 146568   ;;  %v700_v0 = vmov 0.0   ;;  %v177_v1 = vld [vmem:[%s820_s30 + $0x10] sm:$0xff] }
  0x36   : > { %140 = vst.msk [vmem:[#allocation2 + $0x18] sm:$0x1] %vm138_vm0, %v700_v0  ;;  %139 = vst.msk [vmem:[#allocation2] sm:$0x1] %vm138_vm0, %v700_v0  ;;  %vm150_vm3 = vcmask 1024   ;;  %vm164_vm4 = vcmask 140424  }
  0x37   : > { %153 = vst.msk [vmem:[#allocation2 + $0x20] sm:$0xff] %vm147_vm1, %v700_v0  ;;  %149 = vst.msk [vmem:[#allocation2 + $0x8] sm:$0xff] %vm147_vm1, %v700_v0  ;;  %v175_v2 = vld [vmem:[%s820_s30] sm:$0xff]  ;;  %s701_s17 = smov 1   ;;  %v178_v3 = vld [vmem:[%s820_s30 + $0x18] sm:$0xff]  ;;  %vm215_vm5 = vcmask 138248  }
  0x38   : > { %141 = vst.msk [vmem:[#allocation2 + $0x30] sm:$0x1] %vm138_vm0, %v700_v0  ;;  %142 = vst.msk [vmem:[#allocation2 + $0x48] sm:$0x1] %vm138_vm0, %v700_v0  ;;  %195 = vrot.lane.b32.xlu1 %v177_v1, %s701_s17  ;;  %191 = vrot.lane.b32.xlu0 %v175_v2, %s701_s17  ;;  %v176_v4 = vld [vmem:[%s820_s30 + $0x8] sm:$0xff]  ;;  %v179_v6 = vld [vmem:[%s820_s30 + $0x20] sm:$0xff] }
  0x39   : > { %143 = vst.msk [vmem:[#allocation2 + $0x11] sm:$0x1] %vm138_vm0, %v700_v0  ;;  %144 = vst.msk [vmem:[#allocation2 + $0x29] sm:$0x1] %vm138_vm0, %v700_v0  ;;  %v180_v5 = vld [vmem:[%s820_s30 + $0x28] sm:$0xff]  ;;  %v182_v7 = vld [vmem:[%s820_s30 + $0x38] sm:$0xff] }
  0x3a   : > { %145 = vst.msk [vmem:[#allocation2 + $0x41] sm:$0x1] %vm138_vm0, %v700_v0  ;;  %146 = vst.msk [vmem:[#allocation2 + $0x59] sm:$0x1] %vm138_vm0, %v700_v0  ;;  %v181_v8 = vld [vmem:[%s820_s30 + $0x30] sm:$0xff]  ;;  %s702_s25 = smov 126  }
  0x3b   : > { %156 = vst.msk [vmem:[#allocation2 + $0x38] sm:$0xff] %vm147_vm1, %v700_v0  ;;  %159 = vst.msk [vmem:[#allocation2 + $0x50] sm:$0xff] %vm147_vm1, %v700_v0  ;;  %s703_s27 = smov 127   ;;  %vm432_vm6 = vcmask 130048   ;;  %s970_s28 = scalar_lea.vmem [#allocation6], %s537_s24 }
  0x3c   : > { %152 = vst.msk [vmem:[#allocation2 + $0x18] sm:$0xff] %vm147_vm1, %v700_v0  ;;  %148 = vst.msk [vmem:[#allocation2] sm:$0xff] %vm147_vm1, %v700_v0  ;;  %197 = vrot.lane.b32.xlu1 %v178_v3, %s701_s17  ;;  %193 = vrot.lane.b32.xlu0 %v176_v4, %s701_s17  ;;  %s548_s29 = sshll.u32 %s738_s10, 10  ;;  %s456_s2 = sshll.u32 %s970_s28, 4  ;;  %s997_s2 = int_to_ptr.vmem [resolvable:$true] %s456_s2 }
  0x3d   : > { %167 = vst.msk [vmem:[#allocation2 + $0x20] sm:$0xff] %vm161_vm2, %v700_v0  ;;  %163 = vst.msk [vmem:[#allocation2 + $0x8] sm:$0xff] %vm161_vm2, %v700_v0  ;;  %s995_s5 = scalar_lea.hbm %s1045_s1, %s548_s29  ;;  %s442_s10 = scalar_lea.sflag [#allocation5], %s814_s23 }
  0x3e   : > { %155 = vst.msk [vmem:[#allocation2 + $0x30] sm:$0xff] %vm147_vm1, %v700_v0  ;;  %158 = vst.msk [vmem:[#allocation2 + $0x48] sm:$0xff] %vm147_vm1, %v700_v0  ;;  %s631_s11 = scalar_lea.vmem %s997_s2, 1024  ;;  %p1054_p12 = scmp.ne.s32.totalorder %s1050_s18, 0 }
  0x3f   : > { %170 = vst.msk [vmem:[#allocation2 + $0x38] sm:$0xff] %vm161_vm2, %v700_v0  ;;  %173 = vst.msk [vmem:[#allocation2 + $0x50] sm:$0xff] %vm161_vm2, %v700_v0  ;;  %p632_p11 = scmp.ne.s32.totalorder %s997_s2, %s631_s11  ;;  %s704_s13 = smov [#allocation6]  }
  0x40   : > { %154 = vst.msk [vmem:[#allocation2 + $0x28] sm:$0x3] %vm150_vm3, %v700_v0  ;;  %151 = vst.msk [vmem:[#allocation2 + $0x10] sm:$0x3] %vm150_vm3, %v700_v0  ;;  %201 = vrot.lane.b32.xlu1 %v180_v5, %s701_s17  ;;  %199 = vrot.lane.b32.xlu0 %v179_v6, %s701_s17  ;;  %s635_s14 = sshll.u32 %s704_s13, 4  ;;  %s636_s14 = int_to_ptr.vmem [resolvable:$false] %s635_s14 }
  0x41   : > { %157 = vst.msk [vmem:[#allocation2 + $0x40] sm:$0x3] %vm150_vm3, %v700_v0  ;;  %160 = vst.msk [vmem:[#allocation2 + $0x58] sm:$0x3] %vm150_vm3, %v700_v0  ;;  %p633_p13 = pnand %p632_p11, %p1054_p12  ;;  %s637_s16 = scalar_lea.vmem %s636_s14, 2048 }
  0x42   : > { %166 = vst.msk [vmem:[#allocation2 + $0x18] sm:$0xff] %vm161_vm2, %v700_v0  ;;  %162 = vst.msk [vmem:[#allocation2] sm:$0xff] %vm161_vm2, %v700_v0  ;;  %p638_p5 = scmp.lt.s32.totalorder %s997_s2, %s636_s14  ;;  %p639_p7 = scmp.lt.s32.totalorder %s637_s16, %s631_s11 }
  0x43   : > { %168 = vst.msk [vmem:[#allocation2 + $0x28] sm:$0x3] %vm164_vm4, %v700_v0  ;;  %165 = vst.msk [vmem:[#allocation2 + $0x10] sm:$0x3] %vm164_vm4, %v700_v0  ;;  %p634_p4 = pneg %p633_p13 }
  0x44   : > { %169 = vst.msk [vmem:[#allocation2 + $0x30] sm:$0xff] %vm161_vm2, %v700_v0  ;;  %172 = vst.msk [vmem:[#allocation2 + $0x48] sm:$0xff] %vm161_vm2, %v700_v0  ;;  %205 = vrot.lane.b32.xlu1 %v182_v7, %s701_s17  ;;  %203 = vrot.lane.b32.xlu0 %v181_v8, %s701_s17  ;;  %p640_p8 = por %p639_p7, %p638_p5 }
  0x45   : > { %171 = vst.msk [vmem:[#allocation2 + $0x40] sm:$0x3] %vm164_vm4, %v700_v0  ;;  %174 = vst.msk [vmem:[#allocation2 + $0x58] sm:$0x3] %vm164_vm4, %v700_v0 }
  0x46   : > { %p641_p10 = pnand %p640_p8, %p634_p4 }
  0xaa   : > { %v196_v9 = vpop.permute.xlu1 %195  ;;  %v192_v10 = vpop.permute.xlu0 %191 }
  0xab   : > { %218 = vst.msk [vmem:[#allocation2 + $0x19] sm:$0xff] %vm215_vm5, %v196_v9  ;;  %216 = vst.msk [vmem:[#allocation2 + $0x1] sm:$0xff] %vm215_vm5, %v192_v10 }
  0xae   : > { %v198_v11 = vpop.permute.xlu1 %197  ;;  %v194_v12 = vpop.permute.xlu0 %193 }
  0xaf   : > { %219 = vst.msk [vmem:[#allocation2 + $0x21] sm:$0xff] %vm215_vm5, %v198_v11  ;;  %217 = vst.msk [vmem:[#allocation2 + $0x9] sm:$0xff] %vm215_vm5, %v194_v12 }
  0xb2   : > { %v202_v13 = vpop.permute.xlu1 %201  ;;  %v200_v14 = vpop.permute.xlu0 %199  ;;  %v224_v15 = vld [vmem:[#allocation2] sm:$0xff]  ;;  %v226_v26 = vld [vmem:[#allocation2 + $0x18] sm:$0xff] }
  0xb3   : > { %221 = vst.msk [vmem:[#allocation2 + $0x39] sm:$0xff] %vm215_vm5, %v202_v13  ;;  %220 = vst.msk [vmem:[#allocation2 + $0x31] sm:$0xff] %vm215_vm5, %v200_v14  ;;  %v232_v41 = vld [vmem:[#allocation2 + $0x1] sm:$0xff]  ;;  %v234_v52 = vld [vmem:[#allocation2 + $0x19] sm:$0xff] }
  0xb4   : > { %v248_v50 = vmul.f32 2.0, %v232_v41  ;;  %v250_v56 = vmul.f32 2.0, %v234_v52 }
  0xb6   : > { %v225_v16 = vld [vmem:[#allocation2 + $0x8] sm:$0xff]  ;;  %v206_v19 = vpop.permute.xlu1 %205  ;;  %v204_v20 = vpop.permute.xlu0 %203  ;;  %v227_v23 = vld [vmem:[#allocation2 + $0x20] sm:$0xff]  ;;  %v256_v58 = vadd.f32 %v248_v50, %v224_v15  ;;  %v258_v62 = vadd.f32 %v250_v56, %v226_v26 }
  0xb7   : > { %v860_v17 = vld [vmem:[#allocation2 + $0xa] sm:$0xff]  ;;  %v862_v18 = vld [vmem:[#allocation2 + $0x2] sm:$0xff]  ;;  %223 = vst.msk [vmem:[#allocation2 + $0x51] sm:$0xff] %vm215_vm5, %v206_v19  ;;  %222 = vst.msk [vmem:[#allocation2 + $0x49] sm:$0xff] %vm215_vm5, %v204_v20 }
  0xb8   : > { %v865_v21 = vsub.f32 %v225_v16, %v860_v17  ;;  %v868_v22 = vsub.f32 %v224_v15, %v862_v18  ;;  %v872_v24 = vld [vmem:[#allocation2 + $0x22] sm:$0xff]  ;;  %v874_v25 = vld [vmem:[#allocation2 + $0x1a] sm:$0xff]  ;;  %v264_v0 = vadd.f32 %v256_v58, %v862_v18 }
  0xb9   : > { %v883_v28 = vsub.f32 %v227_v23, %v872_v24  ;;  %v886_v29 = vsub.f32 %v226_v26, %v874_v25  ;;  %v233_v44 = vld [vmem:[#allocation2 + $0x9] sm:$0xff]  ;;  %v235_v51 = vld [vmem:[#allocation2 + $0x21] sm:$0xff]  ;;  %v932_v6 = vadd.f32 %v258_v62, %v874_v25 }
  0xba   : > { %378 = vrot.lane.b32.xlu1 %v865_v21, %s702_s25  ;;  %376 = vrot.lane.b32.xlu0 %v868_v22, %s702_s25  ;;  %v880_v27 = vld [vmem:[#allocation2 + $0x3a] sm:$0xff]  ;;  %v888_v30 = vld [vmem:[#allocation2 + $0x32] sm:$0xff]  ;;  %v321_v35 = vmul.f32 2.0, %v865_v21  ;;  %v320_v36 = vmul.f32 2.0, %v868_v22  ;;  %v249_v49 = vmul.f32 2.0, %v233_v44  ;;  %v251_v55 = vmul.f32 2.0, %v235_v51 }
  0xbb   : > { %v229_v31 = vld [vmem:[#allocation2 + $0x38] sm:$0xff]  ;;  %v228_v32 = vld [vmem:[#allocation2 + $0x30] sm:$0xff]  ;;  %v323_v39 = vmul.f32 2.0, %v883_v28  ;;  %v322_v40 = vmul.f32 2.0, %v886_v29 }
  0xbc   : > { %v895_v33 = vsub.f32 %v229_v31, %v880_v27  ;;  %v898_v34 = vsub.f32 %v228_v32, %v888_v30  ;;  %v257_v57 = vadd.f32 %v249_v49, %v225_v16  ;;  %v237_v59 = vld [vmem:[#allocation2 + $0x39] sm:$0xff]  ;;  %v236_v60 = vld [vmem:[#allocation2 + $0x31] sm:$0xff]  ;;  %v259_v61 = vadd.f32 %v251_v55, %v227_v23 }
  0xbd   : > { %v253_v1 = vmul.f32 2.0, %v237_v59  ;;  %v252_v2 = vmul.f32 2.0, %v236_v60 }
  0xbe   : > { %382 = vrot.lane.b32.xlu1 %v883_v28, %s702_s25  ;;  %380 = vrot.lane.b32.xlu0 %v886_v29, %s702_s25  ;;  %v247_v37 = vld [vmem:[#allocation2 + $0x52] sm:$0xff]  ;;  %v246_v38 = vld [vmem:[#allocation2 + $0x4a] sm:$0xff]  ;;  %v325_v47 = vmul.f32 2.0, %v895_v33  ;;  %v324_v48 = vmul.f32 2.0, %v898_v34  ;;  %v265_v63 = vadd.f32 %v257_v57, %v860_v17  ;;  %v929_v5 = vadd.f32 %v259_v61, %v872_v24 }
  0xbf   : > { %v231_v42 = vld [vmem:[#allocation2 + $0x50] sm:$0xff]  ;;  %v230_v43 = vld [vmem:[#allocation2 + $0x48] sm:$0xff]  ;;  %v261_v7 = vadd.f32 %v253_v1, %v229_v31  ;;  %v260_v8 = vadd.f32 %v252_v2, %v228_v32 }
  0xc0   : > { %v912_v45 = vsub.f32 %v231_v42, %v247_v37  ;;  %v914_v46 = vsub.f32 %v230_v43, %v246_v38  ;;  %v239_v3 = vld [vmem:[#allocation2 + $0x51] sm:$0xff]  ;;  %v238_v4 = vld [vmem:[#allocation2 + $0x49] sm:$0xff] }
  0xc1   : > { %v255_v9 = vmul.f32 2.0, %v239_v3  ;;  %v254_v10 = vmul.f32 2.0, %v238_v4  ;;  %v939_v11 = vadd.f32 %v261_v7, %v880_v27  ;;  %v942_v12 = vadd.f32 %v260_v8, %v888_v30 }
  0xc2   : > { %386 = vrot.lane.b32.xlu1 %v895_v33, %s702_s25  ;;  %384 = vrot.lane.b32.xlu0 %v898_v34, %s702_s25  ;;  %v327_v53 = vmul.f32 2.0, %v912_v45  ;;  %v326_v54 = vmul.f32 2.0, %v914_v46 }
  0xc3   : > { %v263_v13 = vadd.f32 %v255_v9, %v231_v42  ;;  %v262_v14 = vadd.f32 %v254_v10, %v230_v43 }
  0xc5   : > { %v948_v15 = vadd.f32 %v263_v13, %v247_v37  ;;  %v950_v16 = vadd.f32 %v262_v14, %v246_v38 }
  0xc6   : > { %338 = vrot.lane.b32.xlu1 %v321_v35, %s703_s27  ;;  %336 = vrot.lane.b32.xlu0 %v320_v36, %s703_s27 }
  0xca   : > { %342 = vrot.lane.b32.xlu1 %v323_v39, %s703_s27  ;;  %340 = vrot.lane.b32.xlu0 %v322_v40, %s703_s27 }
  0xce   : > { %346 = vrot.lane.b32.xlu1 %v325_v47, %s703_s27  ;;  %344 = vrot.lane.b32.xlu0 %v324_v48, %s703_s27 }
  0xd2   : > { %350 = vrot.lane.b32.xlu1 %v327_v53, %s703_s27  ;;  %348 = vrot.lane.b32.xlu0 %v326_v54, %s703_s27 }
  0xd6   : > { %290 = vrot.lane.b32.xlu1 %v265_v63, %s702_s25  ;;  %288 = vrot.lane.b32.xlu0 %v264_v0, %s702_s25 }
  0xda   : > { %294 = vrot.lane.b32.xlu1 %v929_v5, %s702_s25  ;;  %292 = vrot.lane.b32.xlu0 %v932_v6, %s702_s25 }
  0xde   : > { %298 = vrot.lane.b32.xlu1 %v939_v11, %s702_s25  ;;  %296 = vrot.lane.b32.xlu0 %v942_v12, %s702_s25 }
  0xe2   : > { %302 = vrot.lane.b32.xlu1 %v948_v15, %s702_s25  ;;  %300 = vrot.lane.b32.xlu0 %v950_v16, %s702_s25 }
  0xe6   : > { %390 = vrot.lane.b32.xlu1 %v912_v45, %s702_s25  ;;  %388 = vrot.lane.b32.xlu0 %v914_v46, %s702_s25 }
 0x12c   : > { %v379_v17 = vpop.permute.xlu1 %378  ;;  %v377_v18 = vpop.permute.xlu0 %376 }
 0x130   : > { %v383_v19 = vpop.permute.xlu1 %382  ;;  %v381_v20 = vpop.permute.xlu0 %380 }
 0x134   : > { %v387_v23 = vpop.permute.xlu1 %386  ;;  %v385_v24 = vpop.permute.xlu0 %384 }
 0x138   : > { %v339_v25 = vpop.permute.xlu1 %338  ;;  %v337_v26 = vpop.permute.xlu0 %336 }
 0x139   : > { %v361_v35 = vadd.f32 %v339_v25, %v865_v21  ;;  %v360_v36 = vadd.f32 %v337_v26, %v868_v22 }
 0x13b   : > { %v401_v39 = vadd.f32 %v379_v17, %v361_v35  ;;  %v400_v40 = vadd.f32 %v377_v18, %v360_v36 }
 0x13c   : > { %v343_v27 = vpop.permute.xlu1 %342  ;;  %v341_v30 = vpop.permute.xlu0 %340 }
 0x13d   : > { %v363_v41 = vadd.f32 %v343_v27, %v883_v28  ;;  %v362_v42 = vadd.f32 %v341_v30, %v886_v29  ;;  %v417_v49 = vand.u32 2147483647, %v401_v39  ;;  %v416_v50 = vand.u32 2147483647, %v400_v40 }
 0x13f   : > { %v403_v51 = vadd.f32 %v383_v19, %v363_v41  ;;  %v402_v21 = vadd.f32 %v381_v20, %v362_v42 }
 0x140   : > { %v347_v31 = vpop.permute.xlu1 %346  ;;  %v345_v32 = vpop.permute.xlu0 %344 }
 0x141   : > { %v365_v52 = vadd.f32 %v347_v31, %v895_v33  ;;  %v364_v22 = vadd.f32 %v345_v32, %v898_v34  ;;  %v419_v59 = vand.u32 2147483647, %v403_v51  ;;  %v418_v61 = vand.u32 2147483647, %v402_v21 }
 0x143   : > { %v405_v60 = vadd.f32 %v387_v23, %v365_v52  ;;  %v404_v62 = vadd.f32 %v385_v24, %v364_v22 }
 0x144   : > { %v351_v37 = vpop.permute.xlu1 %350  ;;  %v349_v38 = vpop.permute.xlu0 %348 }
 0x148   : > { %v291_v43 = vpop.permute.xlu1 %290  ;;  %v289_v44 = vpop.permute.xlu0 %288 }
 0x149   : > { %v313_v47 = vsub.f32 %v265_v63, %v291_v43  ;;  %v312_v48 = vsub.f32 %v264_v0, %v289_v44 }
 0x14b   : > { %v409_v53 = vand.u32 2147483647, %v313_v47  ;;  %v408_v54 = vand.u32 2147483647, %v312_v48 }
 0x14c   : > { %v295_v55 = vpop.permute.xlu1 %294  ;;  %v293_v28 = vpop.permute.xlu0 %292 }
 0x14d   : > { %v425_v56 = vadd.f32 %v417_v49, %v409_v53  ;;  %v424_v29 = vadd.f32 %v416_v50, %v408_v54  ;;  %v315_v57 = vsub.f32 %v929_v5, %v295_v55  ;;  %v314_v58 = vsub.f32 %v932_v6, %v293_v28 }
 0x14e   : > { %v421_v5 = vand.u32 2147483647, %v405_v60  ;;  %v420_v6 = vand.u32 2147483647, %v404_v62 }
 0x14f   : > { %434 = vst.msk [vmem:[%s970_s28 + $0x8] sm:$0xff] %vm432_vm6, %v425_v56  ;;  %433 = vst.msk [vmem:[%s970_s28] sm:$0xff] %vm432_vm6, %v424_v29  ;;  %v411_v33 = vand.u32 2147483647, %v315_v57  ;;  %v410_v34 = vand.u32 2147483647, %v314_v58 }
 0x150   : > { %v299_v63 = vpop.permute.xlu1 %298  ;;  %v297_v0 = vpop.permute.xlu0 %296 }
 0x151   : > { %v427_v1 = vadd.f32 %v419_v59, %v411_v33  ;;  %v426_v2 = vadd.f32 %v418_v61, %v410_v34  ;;  %v317_v3 = vsub.f32 %v939_v11, %v299_v63  ;;  %v316_v4 = vsub.f32 %v942_v12, %v297_v0 }
 0x152   : > { %v367_v11 = vadd.f32 %v351_v37, %v912_v45  ;;  %v366_v12 = vadd.f32 %v349_v38, %v914_v46 }
 0x153   : > { %436 = vst.msk [vmem:[%s970_s28 + $0x18] sm:$0xff] %vm432_vm6, %v427_v1  ;;  %435 = vst.msk [vmem:[%s970_s28 + $0x10] sm:$0xff] %vm432_vm6, %v426_v2  ;;  %v413_v7 = vand.u32 2147483647, %v317_v3  ;;  %v412_v8 = vand.u32 2147483647, %v316_v4 }
 0x154   : > { %v303_v9 = vpop.permute.xlu1 %302  ;;  %v301_v10 = vpop.permute.xlu0 %300 }
 0x155   : > { %v429_v13 = vadd.f32 %v421_v5, %v413_v7  ;;  %v428_v14 = vadd.f32 %v420_v6, %v412_v8  ;;  %v319_v17 = vsub.f32 %v948_v15, %v303_v9  ;;  %v318_v18 = vsub.f32 %v950_v16, %v301_v10 }
 0x157   : > { %438 = vst.msk [vmem:[%s970_s28 + $0x28] sm:$0xff] %vm432_vm6, %v429_v13  ;;  %437 = vst.msk [vmem:[%s970_s28 + $0x20] sm:$0xff] %vm432_vm6, %v428_v14  ;;  %v415_v15 = vand.u32 2147483647, %v319_v17  ;;  %v414_v45 = vand.u32 2147483647, %v318_v18 }
 0x158   : > { %v391_v19 = vpop.permute.xlu1 %390  ;;  %v389_v20 = vpop.permute.xlu0 %388 }
 0x159   : > { %v407_v23 = vadd.f32 %v391_v19, %v367_v11  ;;  %v406_v24 = vadd.f32 %v389_v20, %v366_v12 }
 0x15b   : > { %v423_v25 = vand.u32 2147483647, %v407_v23  ;;  %v422_v46 = vand.u32 2147483647, %v406_v24 }
 0x15d   : > { %v431_v16 = vadd.f32 %v423_v25, %v415_v15  ;;  %v430_v26 = vadd.f32 %v422_v46, %v414_v45 }
 0x15f   : > { %440 = vst.msk [vmem:[%s970_s28 + $0x38] sm:$0xff] %vm432_vm6, %v431_v16  ;;  %439 = vst.msk [vmem:[%s970_s28 + $0x30] sm:$0xff] %vm432_vm6, %v430_v26 }
 0x160   : > { %644 = shalt.err (!%p641_p10)
}
 0x161   : > { %s645_s20 = scalar_lea.hbm %s995_s5, 1024  ;;  %s649_s24 = scalar_lea.hbm %s1045_s1, 2048 }
 0x162   : > { %p646_p0 = scmp.ne.s32.totalorder %s995_s5, %s645_s20  ;;  %p650_p1 = scmp.lt.s32.totalorder %s995_s5, %s1045_s1 }
 0x163   : > { %p651_p3 = scmp.lt.s32.totalorder %s649_s24, %s645_s20 }
 0x164   : > { %p647_p2 = pnand %p646_p0, %p1054_p12 }
 0x165   : > { %p652_p6 = por %p651_p3, %p650_p1 }
 0x166   : > { %p648_p9 = pneg %p647_p2 }
 0x168   : > { %p653_p11 = pnand %p652_p6, %p648_p9 }
 0x16a   : > { %656 = shalt.err (!%p653_p11)
}
 0x16b   : > { %s705_s17 = smov 128   ;;  %s706_s25 = smov 8  }
 0x16c   : > { %551 = dma.vmem_to_hbm [thread:$0]  (%p1054_p12), %s997_s2, 1024, %s995_s5, %s442_s10, %s705_s17, %s705_s17, %s706_s25  }
 0x16d PF: > { %s471_s27 = sand.u32 1, %s683_s6   ;;  %p1055_p13 = scmp.ne.s32.totalorder %s1051_s19, 0 }
 0x16e   : > { %p1056_p4 = scmp.ge.s32.totalorder %s695_s9, 2  ;;  %s472_s28 = scalar_lea.sflag [#allocation5], %s471_s27 }
 0x170   : > { %p558_p5 = pnand %p1056_p4, %p1055_p13 }
 0x172   : > { %p559_p7 = pneg %p558_p5 }
 0x174   : > { %678 = dma.done.wait (%p559_p7), %s472_s28, 1024  }
 0x175   : > { %680 = vsyncadd (%p559_p7), %s472_s28, 4294966272  ;;  %p14_p8 = scmp.ge.s32.totalorder %s742_s12, 4   ;;  %s1057_s6 = smov %s687_s7 }
 0x176   : > { %s1058_s7 = smov %s691_s8  ;;  %s1059_s8 = smov %s754_s15 }
 0x177   : > { %s1060_s9 = smov %s742_s12  ;;  %16 = sbr.rel (!%p14_p8) target bundleno = 5 (0x5), region = 69 }
 0x17c   :  { %477 = vsyncpa [#allocation4], 1 }
 0x17d   :  { %479 = vsyncpa [#allocation4 + $0x1], 1 }
 0x17e   :  { %480 = vsyncpa [#allocation5], 1 }
 0x17f   :  { %482 = vsyncpa [#allocation5 + $0x1], 1 }

</bundles_post_ra>
